<compile_context>
chip_gen: v7x
topology: tpu7x:2x2x1
jax: 0.10.0
libtpu: 0.0.40
codegen_flags: <defaults>
</compile_context>

<pallas_src>
import functools

import jax
import jax.numpy as jnp
from jax.experimental import pallas as pl
from jax.experimental.pallas import tpu as pltpu

EPS = 1e-5           # kept from the reference module; softplus loss is the exact EPS->0 form
LRELU_SLOPE = 0.2    # TODO(synk): canonical GAN slope; PyTorch nn.LeakyReLU default would be 0.01


# ----------------------------------------------------------------------------
# Fused per-tile kernel: generator + discriminator(real|fake) + per-sample loss
# ----------------------------------------------------------------------------
def _vanila_gan_kernel(
    x_ref, z_ref,
    g_w1_ref, g_b1_ref, g_w2_ref, g_b2_ref,
    d_w1_ref, d_b1_ref, d_w2_ref, d_b2_ref,
    d_out_ref, loss_ref,
    xx_ref,
    *, tile_b,
):
    """x_ref: [tile_b, D] bf16; z_ref: [tile_b, L] bf16.
    d_out_ref: [2*tile_b, 1] f32  (rows [0:tile_b]=D(real), [tile_b:]=D(fake)).
    loss_ref : [tile_b, 1]   f32  per-sample -(log D(real) + log(1 - D(fake))).
    xx_ref   : [2*tile_b, D] bf16 VMEM scratch holding stacked [real; fake]."""
    # ---- Generator: latent -> hidden -> data (MXU matmuls, f32 accumulate) --
    h_g = jnp.dot(z_ref[...], g_w1_ref[...], preferred_element_type=jnp.float32)
    h_g = jnp.maximum(h_g + g_b1_ref[...], 0.0)                        # relu (VPU)
    x_fake = jnp.dot(h_g.astype(jnp.bfloat16), g_w2_ref[...],
                     preferred_element_type=jnp.float32)
    x_fake = jnp.tanh(x_fake + g_b2_ref[...])                          # tanh (EUP)

    # ---- Stack [real; fake] into VMEM scratch (no concatenate temporary) ---
    xx_ref[0:tile_b, :] = x_ref[...]
    xx_ref[tile_b:2 * tile_b, :] = x_fake.astype(jnp.bfloat16)

    # ---- Discriminator layer 1, once on the stacked 2*tile_b batch ---------
    h_d = jnp.dot(xx_ref[...], d_w1_ref[...], preferred_element_type=jnp.float32)
    h_d = h_d + d_b1_ref[...]
    h_d = jnp.where(h_d > 0.0, h_d, LRELU_SLOPE * h_d)                 # leaky relu

    # ---- Discriminator layer 2 (N=1): VPU multiply + lane reduce -----------
    logits = jnp.sum(h_d * d_w2_ref[...], axis=-1, keepdims=True) + d_b2_ref[...]
    d_out_ref[...] = (1.0 / (1.0 + jnp.exp(-logits))).astype(d_out_ref.dtype)

    # ---- Per-sample loss straight from logits (exact softplus identity) ----
    #   -(log sigmoid(lr) + log(1 - sigmoid(lf))) = softplus(-lr) + softplus(lf)
    lr = logits[0:tile_b]
    lf = logits[tile_b:2 * tile_b]

    def softplus(v):
        return jnp.maximum(v, 0.0) + jnp.log(1.0 + jnp.exp(-jnp.abs(v)))

    loss_ref[...] = softplus(-lr) + softplus(lf)


# ----------------------------------------------------------------------------
# Wrapper: batch tiling, bf16 operand prep, pallas_call, output assembly
# ----------------------------------------------------------------------------
def vanila_gan_forward(params, x_nchw, z):
    """x_nchw: [B, C, H, W] real images; z: [B, latent_dim] noise."""
    B = x_nchw.shape[0]
    D = int(x_nchw.size // B)
    L = z.shape[1]
    H = params["g_w1"].shape[1]

    # Batch tile: multiple of 8 sublanes; capped so per-tile VMEM stays small
    # (~3.5 MiB at D=1024) -> fits v5e's 16 MiB scoped default and v7x's 64 MiB
    # physical VMEM without raising vmem_limit_bytes.
    tile_b = 256 if B >= 256 else max(8, ((B + 7) // 8) * 8)
    num_tiles = pl.cdiv(B, tile_b)
    bp = num_tiles * tile_b

    # bf16 matmul operands (MXU fast path; halves x DMA and scratch footprint).
    x_flat = x_nchw.reshape(B, D).astype(jnp.bfloat16)
    z_bf = z.astype(jnp.bfloat16)
    if bp != B:
        # Single pad pass; no zeros+scatter round trip. Padded rows produce
        # garbage d/ loss values that are sliced off below.
        x_flat = jnp.pad(x_flat, ((0, bp - B), (0, 0)))
        z_bf = jnp.pad(z_bf, ((0, bp - B), (0, 0)))

    g_w1 = params["g_w1"].astype(jnp.bfloat16)
    g_w2 = params["g_w2"].astype(jnp.bfloat16)
    d_w1 = params["d_w1"].astype(jnp.bfloat16)
    g_b1 = params["g_b1"].reshape(1, H).astype(jnp.float32)
    g_b2 = params["g_b2"].reshape(1, D).astype(jnp.float32)
    d_b1 = params["d_b1"].reshape(1, H).astype(jnp.float32)
    d_w2_row = params["d_w2"].reshape(1, H).astype(jnp.float32)   # [H,1] -> [1,H]
    d_b2 = params["d_b2"].reshape(1, 1).astype(jnp.float32)

    batch2d = lambda i: (i, 0)        # tiled along the batch (sublane) dim
    const2d = lambda i: (0, 0)        # DMA'd once, VMEM-resident across tiles

    d_out, per_sample = pl.pallas_call(
        functools.partial(_vanila_gan_kernel, tile_b=tile_b),
        out_shape=(
            jax.ShapeDtypeStruct((2 * bp, 1), jnp.float32),   # [D(real); D(fake)] per tile
            jax.ShapeDtypeStruct((bp, 1), jnp.float32),       # per-sample loss
        ),
        grid=(num_tiles,),
        in_specs=[
            pl.BlockSpec((tile_b, D), batch2d),   # x tile
            pl.BlockSpec((tile_b, L), batch2d),   # z tile
            pl.BlockSpec((L, H), const2d),        # g_w1
            pl.BlockSpec((1, H), const2d),        # g_b1
            pl.BlockSpec((H, D), const2d),        # g_w2
            pl.BlockSpec((1, D), const2d),        # g_b2
            pl.BlockSpec((D, H), const2d),        # d_w1
            pl.BlockSpec((1, H), const2d),        # d_b1
            pl.BlockSpec((1, H), const2d),        # d_w2 (row form)
            pl.BlockSpec((1, 1), const2d),        # d_b2
        ],
        out_specs=(
            pl.BlockSpec((2 * tile_b, 1), batch2d),
            pl.BlockSpec((tile_b, 1), batch2d),
        ),
        scratch_shapes=[pltpu.VMEM((2 * tile_b, D), jnp.bfloat16)],
        compiler_params=pltpu.CompilerParams(
            dimension_semantics=("parallel",),    # v7x: shard batch tiles over both TCs
        ),
    )(x_flat, z_bf, g_w1, g_b1, g_w2, g_b2, d_w1, d_b1, d_w2_row, d_b2)

    # De-interleave the per-tile [real; fake] output and drop padded rows.
    d_out = d_out.reshape(num_tiles, 2, tile_b, 1)
    d_real = d_out[:, 0].reshape(bp, 1)[:B]
    d_fake = d_out[:, 1].reshape(bp, 1)[:B]
    loss = (jnp.sum(per_sample[:B]) / B).reshape(1, 1)   # mean over TRUE batch only
    return d_real, d_fake, loss


# ----------------------------------------------------------------------------
# Parameters (PyTorch-Linear-style init)
# ----------------------------------------------------------------------------
def init_params(key, latent_dim, hidden_dim, data_dim):
    ks = jax.random.split(key, 8)

    def lin(kw, kb, fan_in, fan_out):
        bound = 1.0 / jnp.sqrt(jnp.float32(fan_in))
        w = jax.random.uniform(kw, (fan_in, fan_out), jnp.float32, -bound, bound)
        b = jax.random.uniform(kb, (fan_out,), jnp.float32, -bound, bound)
        return w, b

    # Generator (encoder_net analog): latent -> hidden -> data
    g_w1, g_b1 = lin(ks[0], ks[1], latent_dim, hidden_dim)
    g_w2, g_b2 = lin(ks[2], ks[3], hidden_dim, data_dim)
    # Discriminator (decoder_net analog): data -> hidden -> 1
    d_w1, d_b1 = lin(ks[4], ks[5], data_dim, hidden_dim)
    d_w2, d_b2 = lin(ks[6], ks[7], hidden_dim, 1)
    return dict(g_w1=g_w1, g_b1=g_b1, g_w2=g_w2, g_b2=g_b2,
                d_w1=d_w1, d_b1=d_b1, d_w2=d_w2, d_b2=d_b2)


# ----------------------------------------------------------------------------
# Driver
# ----------------------------------------------------------------------------
if __name__ == "__main__":
    B, C, Himg, Wimg = 2, 4, 16, 16     # small NCHW real input
    latent_dim = 16
    hidden_dim = 32
    data_dim = C * Himg * Wimg          # 1024

    key = jax.random.PRNGKey(0)
    k_params, k_x, k_z = jax.random.split(key, 3)

    params = init_params(k_params, latent_dim, hidden_dim, data_dim)
    x = jax.random.normal(k_x, (B, C, Himg, Wimg), jnp.float32)
    z = jax.random.normal(k_z, (B, latent_dim), jnp.float32)

    d_real, d_fake, loss = vanila_gan_forward(params, x, z)
    jax.block_until_ready((d_real, d_fake, loss))

    assert d_real.shape == (B, 1)
    assert d_fake.shape == (B, 1)
    assert loss.shape == (1, 1)
    assert bool(jnp.isfinite(d_real).all())
    assert bool(jnp.isfinite(d_fake).all())
    assert bool(jnp.isfinite(loss).all())
    # Discriminator outputs must be valid sigmoid probabilities.
    assert bool(((d_real >= 0.0) & (d_real <= 1.0)).all())
    assert bool(((d_fake >= 0.0) & (d_fake <= 1.0)).all())
    # Non-saturated logits at init => loss should be positive.
    assert bool((loss > 0.0).all())

    print("KERNEL_OK")
</pallas_src>

<mosaic_0001>
module attributes {stable_mosaic.version = 11 : i64} {
  func.func @_vanila_gan_kernel(%arg0: i32, %arg1: memref<8x1024xbf16, #tpu.memory_space<vmem>>, %arg2: memref<8x16xbf16, #tpu.memory_space<vmem>>, %arg3: memref<16x32xbf16, #tpu.memory_space<vmem>>, %arg4: memref<1x32xf32, #tpu.memory_space<vmem>>, %arg5: memref<32x1024xbf16, #tpu.memory_space<vmem>>, %arg6: memref<1x1024xf32, #tpu.memory_space<vmem>>, %arg7: memref<1024x32xbf16, #tpu.memory_space<vmem>>, %arg8: memref<1x32xf32, #tpu.memory_space<vmem>>, %arg9: memref<1x32xf32, #tpu.memory_space<vmem>>, %arg10: memref<1x1xf32, #tpu.memory_space<vmem>>, %arg11: memref<16x1xf32, #tpu.memory_space<vmem>>, %arg12: memref<8x1xf32, #tpu.memory_space<vmem>>, %arg13: memref<16x1024xbf16, #tpu.memory_space<vmem>>) attributes {dimension_semantics = [#tpu.dimension_semantics<parallel>], iteration_bounds = array<i64: 1>, scalar_prefetch = 0 : i64, scratch_operands = 1 : i64, tpu.core_type = #tpu.core_type<tc>, window_params = [{transform_indices = @transform_0, window_bounds = array<i64: 8, 1024>}, {transform_indices = @transform_1, window_bounds = array<i64: 8, 16>}, {pipeline_mode = #tpu.pipeline_mode<synchronous>, transform_indices = @transform_2, window_bounds = array<i64: 16, 32>}, {pipeline_mode = #tpu.pipeline_mode<synchronous>, transform_indices = @transform_3, window_bounds = array<i64: 1, 32>}, {pipeline_mode = #tpu.pipeline_mode<synchronous>, transform_indices = @transform_4, window_bounds = array<i64: 32, 1024>}, {pipeline_mode = #tpu.pipeline_mode<synchronous>, transform_indices = @transform_5, window_bounds = array<i64: 1, 1024>}, {pipeline_mode = #tpu.pipeline_mode<synchronous>, transform_indices = @transform_6, window_bounds = array<i64: 1024, 32>}, {pipeline_mode = #tpu.pipeline_mode<synchronous>, transform_indices = @transform_7, window_bounds = array<i64: 1, 32>}, {pipeline_mode = #tpu.pipeline_mode<synchronous>, transform_indices = @transform_8, window_bounds = array<i64: 1, 32>}, {pipeline_mode = #tpu.pipeline_mode<synchronous>, transform_indices = @transform_9, window_bounds = array<i64: 1, 1>}, {transform_indices = @transform_10, window_bounds = array<i64: 16, 1>}, {transform_indices = @transform_11, window_bounds = array<i64: 8, 1>}]} {
    %c0 = arith.constant 0 : index
    %c0_0 = arith.constant 0 : index
    %0 = vector.load %arg2[%c0, %c0_0] : memref<8x16xbf16, #tpu.memory_space<vmem>>, vector<8x16xbf16>
    %c0_1 = arith.constant 0 : index
    %c0_2 = arith.constant 0 : index
    %1 = vector.load %arg3[%c0_1, %c0_2] : memref<16x32xbf16, #tpu.memory_space<vmem>>, vector<16x32xbf16>
    %cst = arith.constant dense<0.000000e+00> : vector<8x32xf32>
    %2 = tpu.matmul %0, %1, %cst {dimension_numbers = #tpu.dot_dimension_numbers<[1], [0], [0], [1], [0, 0, 1, 1], [], []>} : vector<8x16xbf16>, vector<16x32xbf16>, vector<8x32xf32> -> vector<8x32xf32>
    %c0_3 = arith.constant 0 : index
    %c0_4 = arith.constant 0 : index
    %3 = vector.load %arg4[%c0_3, %c0_4] : memref<1x32xf32, #tpu.memory_space<vmem>>, vector<1x32xf32>
    %4 = vector.broadcast %3 : vector<1x32xf32> to vector<8x32xf32>
    %5 = arith.addf %2, %4 : vector<8x32xf32>
    %cst_5 = arith.constant 0.000000e+00 : f32
    %6 = vector.broadcast %cst_5 : f32 to vector<8x32xf32>
    %7 = arith.maximumf %5, %6 : vector<8x32xf32>
    %8 = arith.truncf %7 : vector<8x32xf32> to vector<8x32xbf16>
    %c0_6 = arith.constant 0 : index
    %c0_7 = arith.constant 0 : index
    %9 = vector.load %arg5[%c0_6, %c0_7] : memref<32x1024xbf16, #tpu.memory_space<vmem>>, vector<32x1024xbf16>
    %cst_8 = arith.constant dense<0.000000e+00> : vector<8x1024xf32>
    %10 = tpu.matmul %8, %9, %cst_8 {dimension_numbers = #tpu.dot_dimension_numbers<[1], [0], [0], [1], [0, 0, 1, 1], [], []>} : vector<8x32xbf16>, vector<32x1024xbf16>, vector<8x1024xf32> -> vector<8x1024xf32>
    %c0_9 = arith.constant 0 : index
    %c0_10 = arith.constant 0 : index
    %11 = vector.load %arg6[%c0_9, %c0_10] : memref<1x1024xf32, #tpu.memory_space<vmem>>, vector<1x1024xf32>
    %12 = vector.broadcast %11 : vector<1x1024xf32> to vector<8x1024xf32>
    %13 = arith.addf %10, %12 : vector<8x1024xf32>
    %14 = math.tanh %13 : vector<8x1024xf32>
    %c0_11 = arith.constant 0 : index
    %c0_12 = arith.constant 0 : index
    %15 = vector.load %arg1[%c0_11, %c0_12] : memref<8x1024xbf16, #tpu.memory_space<vmem>>, vector<8x1024xbf16>
    %c0_13 = arith.constant 0 : index
    %c0_14 = arith.constant 0 : index
    %16 = vector.load %arg13[%c0_13, %c0_14] : memref<16x1024xbf16, #tpu.memory_space<vmem>>, vector<8x1024xbf16>
    tpu.vector_store %arg13[%c0_13, %c0_14], %15 {strides = array<i32>} : memref<16x1024xbf16, #tpu.memory_space<vmem>>, vector<8x1024xbf16>,
    %17 = arith.truncf %14 : vector<8x1024xf32> to vector<8x1024xbf16>
    %c8 = arith.constant 8 : index
    %c0_15 = arith.constant 0 : index
    %18 = vector.load %arg13[%c8, %c0_15] : memref<16x1024xbf16, #tpu.memory_space<vmem>>, vector<8x1024xbf16>
    tpu.vector_store %arg13[%c8, %c0_15], %17 {strides = array<i32>} : memref<16x1024xbf16, #tpu.memory_space<vmem>>, vector<8x1024xbf16>,
    %c0_16 = arith.constant 0 : index
    %c0_17 = arith.constant 0 : index
    %19 = vector.load %arg13[%c0_16, %c0_17] : memref<16x1024xbf16, #tpu.memory_space<vmem>>, vector<16x1024xbf16>
    %c0_18 = arith.constant 0 : index
    %c0_19 = arith.constant 0 : index
    %20 = vector.load %arg7[%c0_18, %c0_19] : memref<1024x32xbf16, #tpu.memory_space<vmem>>, vector<1024x32xbf16>
    %cst_20 = arith.constant dense<0.000000e+00> : vector<16x32xf32>
    %21 = tpu.matmul %19, %20, %cst_20 {dimension_numbers = #tpu.dot_dimension_numbers<[1], [0], [0], [1], [0, 0, 1, 1], [], []>} : vector<16x1024xbf16>, vector<1024x32xbf16>, vector<16x32xf32> -> vector<16x32xf32>
    %c0_21 = arith.constant 0 : index
    %c0_22 = arith.constant 0 : index
    %22 = vector.load %arg8[%c0_21, %c0_22] : memref<1x32xf32, #tpu.memory_space<vmem>>, vector<1x32xf32>
    %23 = vector.broadcast %22 : vector<1x32xf32> to vector<16x32xf32>
    %24 = arith.addf %21, %23 : vector<16x32xf32>
    %cst_23 = arith.constant 0.000000e+00 : f32
    %25 = vector.broadcast %cst_23 : f32 to vector<16x32xf32>
    %26 = arith.cmpf ogt, %24, %25 : vector<16x32xf32>
    %cst_24 = arith.constant 2.000000e-01 : f32
    %27 = vector.broadcast %cst_24 : f32 to vector<16x32xf32>
    %28 = arith.mulf %27, %24 : vector<16x32xf32>
    %29 = arith.select %26, %24, %28 : vector<16x32xi1>, vector<16x32xf32>
    %c0_25 = arith.constant 0 : index
    %c0_26 = arith.constant 0 : index
    %30 = vector.load %arg9[%c0_25, %c0_26] : memref<1x32xf32, #tpu.memory_space<vmem>>, vector<1x32xf32>
    %31 = vector.broadcast %30 : vector<1x32xf32> to vector<16x32xf32>
    %32 = arith.mulf %29, %31 : vector<16x32xf32>
    %cst_27 = arith.constant dense<0.000000e+00> : vector<16xf32>
    %33 = vector.multi_reduction <add>, %32, %cst_27 [1] : vector<16x32xf32> to vector<16xf32>
    %34 = vector.shape_cast %33 : vector<16xf32> to vector<16x1xf32>
    %c0_28 = arith.constant 0 : index
    %c0_29 = arith.constant 0 : index
    %35 = vector.load %arg10[%c0_28, %c0_29] : memref<1x1xf32, #tpu.memory_space<vmem>>, vector<1x1xf32>
    %36 = vector.broadcast %35 : vector<1x1xf32> to vector<16x1xf32>
    %37 = arith.addf %34, %36 : vector<16x1xf32>
    %cst_30 = arith.constant 0.000000e+00 : f32
    %38 = vector.broadcast %cst_30 : f32 to vector<16x1xf32>
    %39 = arith.subf %38, %37 : vector<16x1xf32>
    %40 = math.exp %39 : vector<16x1xf32>
    %cst_31 = arith.constant 1.000000e+00 : f32
    %41 = vector.broadcast %cst_31 : f32 to vector<16x1xf32>
    %42 = arith.addf %41, %40 : vector<16x1xf32>
    %cst_32 = arith.constant 1.000000e+00 : f32
    %43 = vector.broadcast %cst_32 : f32 to vector<16x1xf32>
    %44 = arith.divf %43, %42 : vector<16x1xf32>
    %c0_33 = arith.constant 0 : index
    %c0_34 = arith.constant 0 : index
    %45 = vector.load %arg11[%c0_33, %c0_34] : memref<16x1xf32, #tpu.memory_space<vmem>>, vector<16x1xf32>
    tpu.vector_store %arg11[%c0_33, %c0_34], %44 {strides = array<i32>} : memref<16x1xf32, #tpu.memory_space<vmem>>, vector<16x1xf32>,
    %46 = vector.extract_strided_slice %37 {offsets = [0, 0], sizes = [8, 1], strides = [1, 1]} : vector<16x1xf32> to vector<8x1xf32>
    %47 = vector.extract_strided_slice %37 {offsets = [8, 0], sizes = [8, 1], strides = [1, 1]} : vector<16x1xf32> to vector<8x1xf32>
    %cst_35 = arith.constant 0.000000e+00 : f32
    %48 = vector.broadcast %cst_35 : f32 to vector<8x1xf32>
    %49 = arith.subf %48, %46 : vector<8x1xf32>
    %cst_36 = arith.constant 0.000000e+00 : f32
    %50 = vector.broadcast %cst_36 : f32 to vector<8x1xf32>
    %51 = arith.maximumf %49, %50 : vector<8x1xf32>
    %52 = math.absf %49 : vector<8x1xf32>
    %cst_37 = arith.constant 0.000000e+00 : f32
    %53 = vector.broadcast %cst_37 : f32 to vector<8x1xf32>
    %54 = arith.subf %53, %52 : vector<8x1xf32>
    %55 = math.exp %54 : vector<8x1xf32>
    %cst_38 = arith.constant 1.000000e+00 : f32
    %56 = vector.broadcast %cst_38 : f32 to vector<8x1xf32>
    %57 = arith.addf %56, %55 : vector<8x1xf32>
    %58 = math.log %57 : vector<8x1xf32>
    %59 = arith.addf %51, %58 : vector<8x1xf32>
    %cst_39 = arith.constant 0.000000e+00 : f32
    %60 = vector.broadcast %cst_39 : f32 to vector<8x1xf32>
    %61 = arith.maximumf %47, %60 : vector<8x1xf32>
    %62 = math.absf %47 : vector<8x1xf32>
    %cst_40 = arith.constant 0.000000e+00 : f32
    %63 = vector.broadcast %cst_40 : f32 to vector<8x1xf32>
    %64 = arith.subf %63, %62 : vector<8x1xf32>
    %65 = math.exp %64 : vector<8x1xf32>
    %cst_41 = arith.constant 1.000000e+00 : f32
    %66 = vector.broadcast %cst_41 : f32 to vector<8x1xf32>
    %67 = arith.addf %66, %65 : vector<8x1xf32>
    %68 = math.log %67 : vector<8x1xf32>
    %69 = arith.addf %61, %68 : vector<8x1xf32>
    %70 = arith.addf %59, %69 : vector<8x1xf32>
    %c0_42 = arith.constant 0 : index
    %c0_43 = arith.constant 0 : index
    %71 = vector.load %arg12[%c0_42, %c0_43] : memref<8x1xf32, #tpu.memory_space<vmem>>, vector<8x1xf32>
    tpu.vector_store %arg12[%c0_42, %c0_43], %70 {strides = array<i32>} : memref<8x1xf32, #tpu.memory_space<vmem>>, vector<8x1xf32>,
    return
  }
  func.func @transform_0(%arg0: i32) -> (i32, i32) {
    %c0_i32 = arith.constant 0 : i32
    %c0_i32_0 = arith.constant 0 : i32
    return %arg0, %c0_i32 : i32, i32
  }
  func.func @transform_1(%arg0: i32) -> (i32, i32) {
    %c0_i32 = arith.constant 0 : i32
    %c0_i32_0 = arith.constant 0 : i32
    return %arg0, %c0_i32 : i32, i32
  }
  func.func @transform_2(%arg0: i32) -> (i32, i32) {
    %c0_i32 = arith.constant 0 : i32
    %c0_i32_0 = arith.constant 0 : i32
    %c0_i32_1 = arith.constant 0 : i32
    return %c0_i32, %c0_i32_0 : i32, i32
  }
  func.func @transform_3(%arg0: i32) -> (i32, i32) {
    %c0_i32 = arith.constant 0 : i32
    %c0_i32_0 = arith.constant 0 : i32
    %c0_i32_1 = arith.constant 0 : i32
    return %c0_i32, %c0_i32_0 : i32, i32
  }
  func.func @transform_4(%arg0: i32) -> (i32, i32) {
    %c0_i32 = arith.constant 0 : i32
    %c0_i32_0 = arith.constant 0 : i32
    %c0_i32_1 = arith.constant 0 : i32
    return %c0_i32, %c0_i32_0 : i32, i32
  }
  func.func @transform_5(%arg0: i32) -> (i32, i32) {
    %c0_i32 = arith.constant 0 : i32
    %c0_i32_0 = arith.constant 0 : i32
    %c0_i32_1 = arith.constant 0 : i32
    return %c0_i32, %c0_i32_0 : i32, i32
  }
  func.func @transform_6(%arg0: i32) -> (i32, i32) {
    %c0_i32 = arith.constant 0 : i32
    %c0_i32_0 = arith.constant 0 : i32
    %c0_i32_1 = arith.constant 0 : i32
    return %c0_i32, %c0_i32_0 : i32, i32
  }
  func.func @transform_7(%arg0: i32) -> (i32, i32) {
    %c0_i32 = arith.constant 0 : i32
    %c0_i32_0 = arith.constant 0 : i32
    %c0_i32_1 = arith.constant 0 : i32
    return %c0_i32, %c0_i32_0 : i32, i32
  }
  func.func @transform_8(%arg0: i32) -> (i32, i32) {
    %c0_i32 = arith.constant 0 : i32
    %c0_i32_0 = arith.constant 0 : i32
    %c0_i32_1 = arith.constant 0 : i32
    return %c0_i32, %c0_i32_0 : i32, i32
  }
  func.func @transform_9(%arg0: i32) -> (i32, i32) {
    %c0_i32 = arith.constant 0 : i32
    %c0_i32_0 = arith.constant 0 : i32
    %c0_i32_1 = arith.constant 0 : i32
    return %c0_i32, %c0_i32_0 : i32, i32
  }
  func.func @transform_10(%arg0: i32) -> (i32, i32) {
    %c0_i32 = arith.constant 0 : i32
    %c0_i32_0 = arith.constant 0 : i32
    return %arg0, %c0_i32 : i32, i32
  }
  func.func @transform_11(%arg0: i32) -> (i32, i32) {
    %c0_i32 = arith.constant 0 : i32
    %c0_i32_0 = arith.constant 0 : i32
    return %arg0, %c0_i32 : i32, i32
  }
}

</mosaic_0001>

<bundles_post_ra>
// kernel: tpu_custom_call.1
= control target key start
LH: loop header
LB: loop body
LE: loop exit
PB: predicated region body
PF: predicated region fallthrough
CT: control target
= control target key end

     0   :  { %v1562_v0 = vmov 0.0   ;;  %vm1563_vm0 = vmmov 0   ;;  %vm56_vm1 = vcmask 130048   ;;  %v1564_v24 = vmov 0   ;;  %s1913_s2 = inlined_call_operand.vmem [shape: bf16[16,32], index: 2, kind: input, shape index: {}]   ;;  %s1914_s1 = inlined_call_operand.vmem [shape: bf16[8,16], index: 1, kind: input, shape index: {}]   ;;  %s1915_s4 = inlined_call_operand.vmem [shape: bf16[32,1024], index: 4, kind: input, shape index: {}]   ;;  %s1916_s6 = inlined_call_operand.vmem [shape: bf16[1024,32], index: 6, kind: input, shape index: {}]   ;;  %s1917_s3 = inlined_call_operand.vmem [shape: f32[1,32], index: 3, kind: input, shape index: {}]   ;;  %s1918_s0 = inlined_call_operand.vmem [shape: bf16[8,1024], index: 0, kind: input, shape index: {}]   ;;  %s1919_s5 = inlined_call_operand.vmem [shape: f32[1,1024], index: 5, kind: input, shape index: {}]   ;;  %s1920_s9 = inlined_call_operand.<no memory space> [shape: f32[1,1], index: 9, kind: input, shape index: {}]   ;;  %s1921_s7 = inlined_call_operand.vmem [shape: f32[1,32], index: 7, kind: input, shape index: {}]   ;;  %s1922_s8 = inlined_call_operand.vmem [shape: f32[1,32], index: 8, kind: input, shape index: {}]   ;;  %s1923_s10 = inlined_call_operand.vmem [shape: f32[16,1], index: 10, kind: output, shape index: {0}]   ;;  %s1924_s11 = inlined_call_operand.vmem [shape: f32[8,1], index: 11, kind: output, shape index: {1}]  }
   0x1   :  { %1448 = vmatprep.subr.bf16.mxu0 %v1562_v0  ;;  %v1457_v1 = vld [vmem:[%s1913_s2] sm:$0xff]   ;;  %1450 = vmatprep.mubr.msk.bf16.mxu0 %vm1563_vm0, %v1562_v0  ;;  %v103_v6 = vld [vmem:[%s1915_s4 + $0x8] sm:$0xff]  ;;  %v104_v19 = vld [vmem:[%s1915_s4 + $0x10] sm:$0xff]  ;;  %vm240_vm2 = vcmask 261120   ;;  %vm1229_vm5 = vcmask 7168  }
   0x2   :  { %v102_v2 = vld [vmem:[%s1915_s4] sm:$0xff]  ;;  %1449 = vmatpush3.bf16.msra.mxu0 %v1457_v1  ;;  %v107_v7 = vld [vmem:[%s1915_s4 + $0x28] sm:$0xff]  ;;  %v108_v20 = vld [vmem:[%s1915_s4 + $0x30] sm:$0xff]  ;;  %276 = vmatprep.mubr.bf16.mxu1 %v1564_v24 }
   0x3   :  { %v106_v3 = vld [vmem:[%s1915_s4 + $0x20] sm:$0xff]  ;;  %v1265_v8 = vcombine.low %v103_v6, %v107_v7  ;;  %v1266_v9 = vcombine.high %v103_v6, %v107_v7  ;;  %v111_v13 = vld [vmem:[%s1915_s4 + $0x48] sm:$0xff]  ;;  %v105_v21 = vld [vmem:[%s1915_s4 + $0x18] sm:$0xff]  ;;  %v1268_v22 = vcombine.high %v104_v19, %v108_v20  ;;  %v1267_v25 = vcombine.low %v104_v19, %v108_v20 }
   0x4   :  { %v40_v4 = vld [vmem:[%s1914_s1] sm:$0xf]  ;;  %v1264_v5 = vcombine.high %v102_v2, %v106_v3  ;;  %v1263_v10 = vcombine.low %v102_v2, %v106_v3  ;;  %v115_v15 = vld [vmem:[%s1915_s4 + $0x68] sm:$0xff]  ;;  %v109_v23 = vld [vmem:[%s1915_s4 + $0x38] sm:$0xff] }
   0x5   :  { %1451 = vmatmul.mubr.msk.bf16.vlgmr.msra.gmra.mrb[0].mxu0 %vm56_vm1, %v40_v4  ;;  %285 = vmatprep.subr.bf16.mxu0 %v1266_v9  ;;  %v110_v11 = vld [vmem:[%s1915_s4 + $0x40] sm:$0xff]  ;;  %v1273_v16 = vcombine.low %v111_v13, %v115_v15  ;;  %v1274_v17 = vcombine.high %v111_v13, %v115_v15  ;;  %v1269_v26 = vcombine.low %v105_v21, %v109_v23  ;;  %v112_v32 = vld [vmem:[%s1915_s4 + $0x50] sm:$0xff]  ;;  %v113_v35 = vld [vmem:[%s1915_s4 + $0x58] sm:$0xff] }
   0x6   :  { %244 = vmatprep.subr.bf16.mxu1 %v1264_v5  ;;  %286 = vmatpush1.bf16.msra.mxu0 %v1265_v8  ;;  %v114_v12 = vld [vmem:[%s1915_s4 + $0x60] sm:$0xff]  ;;  %v1270_v27 = vcombine.high %v105_v21, %v109_v23  ;;  %v116_v34 = vld [vmem:[%s1915_s4 + $0x70] sm:$0xff]  ;;  %v117_v36 = vld [vmem:[%s1915_s4 + $0x78] sm:$0xff] }
   0x7   :  { %245 = vmatpush1.bf16.msra.mxu1 %v1263_v10  ;;  %v1272_v14 = vcombine.high %v110_v11, %v114_v12  ;;  %v1271_v18 = vcombine.low %v110_v11, %v114_v12  ;;  %287 = vmatprep.subr.bf16.mxu0 %v1274_v17  ;;  %v1260_v28 = vld [vmem:[%s1917_s3] ss:$0 sm:$0xff]  ;;  %v1276_v40 = vcombine.high %v112_v32, %v116_v34  ;;  %v1462_v48 = vld [vmem:[%s1916_s6 + $0x48] sm:$0xff]   ;;  %v1466_v52 = vld [vmem:[%s1916_s6 + $0x50] sm:$0xff]  }
   0x8   :  { %317 = vmatprep.mubr.bf16.mxu0 %v1564_v24  ;;  %v1278_v41 = vcombine.high %v113_v35, %v117_v36  ;;  %v1275_v42 = vcombine.low %v112_v32, %v116_v34  ;;  %v1277_v43 = vcombine.low %v113_v35, %v117_v36  ;;  %v1458_v44 = vld [vmem:[%s1916_s6 + $0x40] sm:$0xff]   ;;  %v1463_v49 = vld [vmem:[%s1916_s6 + $0xc8] sm:$0xff]   ;;  %v1467_v53 = vld [vmem:[%s1916_s6 + $0xd0] sm:$0xff]  }
   0x9   :  { %246 = vmatprep.subr.bf16.mxu1 %v1272_v14  ;;  %v1459_v45 = vld [vmem:[%s1916_s6 + $0xc0] sm:$0xff]   ;;  %v1464_v50 = vld [vmem:[%s1916_s6 + $0x8] sm:$0xff]   ;;  %v1468_v54 = vld [vmem:[%s1916_s6 + $0x10] sm:$0xff]  }
   0xa   :  { %288 = vmatpush1.bf16.msra.mxu0 %v1273_v16  ;;  %v1460_v46 = vld [vmem:[%s1916_s6] sm:$0xff]   ;;  %v1465_v51 = vld [vmem:[%s1916_s6 + $0x88] sm:$0xff]   ;;  %v1469_v55 = vld [vmem:[%s1916_s6 + $0x90] sm:$0xff]  }
   0xb   :  { %247 = vmatpush1.bf16.msra.mxu1 %v1271_v18  ;;  %367 = vmatprep.subr.bf16.mxu0 %v1270_v27  ;;  %v1461_v47 = vld [vmem:[%s1916_s6 + $0x80] sm:$0xff]   ;;  %v1470_v56 = vld [vmem:[%s1916_s6 + $0x58] sm:$0xff]   ;;  %v1478_v0 = vld [vmem:[%s1916_s6 + $0x68] sm:$0xff]  }
   0xc   :  { %326 = vmatprep.subr.bf16.mxu1 %v1268_v22  ;;  %v1471_v57 = vld [vmem:[%s1916_s6 + $0xd8] sm:$0xff]   ;;  %v1474_v60 = vld [vmem:[%s1916_s6 + $0x60] sm:$0xff]   ;;  %v1479_v1 = vld [vmem:[%s1916_s6 + $0xe8] sm:$0xff]  }
   0xd   :  { %v1472_v58 = vld [vmem:[%s1916_s6 + $0x18] sm:$0xff]   ;;  %v1475_v61 = vld [vmem:[%s1916_s6 + $0xe0] sm:$0xff]   ;;  %v1480_v2 = vld [vmem:[%s1916_s6 + $0x28] sm:$0xff]  }
   0xe   :  { %v1473_v59 = vld [vmem:[%s1916_s6 + $0x98] sm:$0xff]   ;;  %v1476_v62 = vld [vmem:[%s1916_s6 + $0x20] sm:$0xff]   ;;  %v1481_v3 = vld [vmem:[%s1916_s6 + $0xa8] sm:$0xff]  }
   0xf   :  { %v1477_v63 = vld [vmem:[%s1916_s6 + $0xa0] sm:$0xff]   ;;  %v417_v5 = vld [vmem:[%s1918_s0 + $0x8] sm:$0xff]  ;;  %v1482_v8 = vld [vmem:[%s1916_s6 + $0x70] sm:$0xff]  }
  0x10   :  { %v416_v4 = vld [vmem:[%s1918_s0] sm:$0xff]  ;;  %v1285_v7 = vcombine.low %v417_v5, %v417_v5  ;;  %v1483_v9 = vld [vmem:[%s1916_s6 + $0xf0] sm:$0xff]   ;;  %v1286_v11 = vcombine.high %v417_v5, %v417_v5  ;;  %v1486_v14 = vld [vmem:[%s1916_s6 + $0x78] sm:$0xff]  }
  0x11   :  { %v1283_v6 = vcombine.low %v416_v4, %v416_v4  ;;  %v1284_v10 = vcombine.high %v416_v4, %v416_v4  ;;  %v1484_v12 = vld [vmem:[%s1916_s6 + $0x30] sm:$0xff]   ;;  %v1487_v15 = vld [vmem:[%s1916_s6 + $0xf8] sm:$0xff]   ;;  %v1492_v20 = vld [vmem:[%s1916_s6 + $0x140] sm:$0xff]  }
  0x12   :  { %v1485_v13 = vld [vmem:[%s1916_s6 + $0xb0] sm:$0xff]   ;;  %450 = vst [vmem:[#allocation2 + $0x10] sm:$0xf] %v1285_v7  ;;  %451 = vst [vmem:[#allocation2 + $0x18] sm:$0xf] %v1286_v11  ;;  %v1488_v16 = vld [vmem:[%s1916_s6 + $0x38] sm:$0xff]  }
  0x13   :  { %448 = vst [vmem:[#allocation2] sm:$0xf] %v1283_v6  ;;  %449 = vst [vmem:[#allocation2 + $0x8] sm:$0xf] %v1284_v10  ;;  %v1489_v17 = vld [vmem:[%s1916_s6 + $0xb8] sm:$0xff]   ;;  %v418_v18 = vld [vmem:[%s1918_s0 + $0x10] sm:$0xff] }
  0x14   :  { %v419_v19 = vld [vmem:[%s1918_s0 + $0x18] sm:$0xff]  ;;  %v1493_v21 = vld [vmem:[%s1916_s6 + $0x1c0] sm:$0xff]   ;;  %v1287_v22 = vcombine.low %v418_v18, %v418_v18 }
  0x15   :  { %v1289_v23 = vcombine.low %v419_v19, %v419_v19 }
  0x16   :  { %452 = vst [vmem:[#allocation2 + $0x20] sm:$0xf] %v1287_v22 }
  0x17   :  { %454 = vst [vmem:[#allocation2 + $0x30] sm:$0xf] %v1289_v23 }
  0xd8   :  { %v94_v29 = vpop.f32.mrb[0].mxu0 }
  0xd9   :  { %v95_v30 = vadd.f32 %v1260_v28, %v94_v29  ;;  %v1452_v31 = vpop.f32.mrb[1].mxu0 }
  0xda   :  { %v97_v33 = vpop.f32.mrb[2].mxu0 }
  0xdb   :  { %v100_v37 = vmax.f32 %v95_v30, 0.0  ;;  %v1453_v38 = vpop.f32.mrb[3].mxu0  ;;  %v118_v30 = vld [vmem:[%s1919_s5] sm:$0xff] }
  0xdd   :  { %v101_v39 = vpack.c.bf16 %v100_v37, %v100_v37 }
  0xdf   :  { %1279 = vmatmul.mubr.msk.bf16.vlgmr.msra.gmra.mrb[0].mxu1 %vm240_vm2, %v101_v39  ;;  %1280 = vmatmul.mubr.msk.bf16.vlgmr.msra.gmra.mrb[4].mxu0 %vm240_vm2, %v101_v39 }
  0xe0   :  { %327 = vmatpush1.bf16.msra.mxu1 %v1267_v25  ;;  %368 = vmatpush1.bf16.msra.mxu0 %v1269_v26  ;;  %v1290_v25 = vcombine.high %v419_v19, %v419_v19  ;;  %v120_v26 = vlaneseq }
  0xe1   :  { %328 = vmatprep.subr.bf16.mxu1 %v1276_v40  ;;  %369 = vmatprep.subr.bf16.mxu0 %v1278_v41 }
  0xe2   :  { %358 = vmatprep.mubr.bf16.mxu1 %v1564_v24  ;;  %399 = vmatprep.mubr.bf16.mxu0 %v1564_v24  ;;  %v1288_v24 = vcombine.high %v418_v18, %v418_v18  ;;  %455 = vst [vmem:[#allocation2 + $0x38] sm:$0xf] %v1290_v25  ;;  %v121_v27 = vshrl.u32 %v120_v26, 7 }
  0xe4   :  { %329 = vmatpush1.bf16.msra.mxu1 %v1275_v42  ;;  %370 = vmatpush1.bf16.msra.mxu0 %v1277_v43  ;;  %453 = vst [vmem:[#allocation2 + $0x28] sm:$0xf] %v1288_v24  ;;  %v122_v28 = vsub.s32 0, %v121_v27  ;;  %v130_v29 = vsub.s32 2, %v121_v27  ;;  %v126_v31 = vsub.s32 1, %v121_v27  ;;  %v134_v32 = vsub.s32 3, %v121_v27 }
  0xe5   :  { %1360 = vmatprep.subr.bf16.mxu1 %v1458_v44  ;;  %1382 = vmatprep.subr.bf16.mxu0 %v1459_v45  ;;  %v138_v43 = vsub.s32 4, %v121_v27  ;;  %v146_v44 = vsub.s32 6, %v121_v27 }
  0xe6   :  { %v123_v33 = vrot.slane %v118_v30, %v122_v28  ;;  %v131_v34 = vrot.slane %v118_v30, %v130_v29  ;;  %v127_v35 = vrot.slane %v118_v30, %v126_v31  ;;  %v135_v36 = vrot.slane %v118_v30, %v134_v32  ;;  %v1496_v28 = vld [vmem:[%s1916_s6 + $0x100] sm:$0xff]   ;;  %v1498_v32 = vld [vmem:[%s1916_s6 + $0x148] sm:$0xff]  }
  0xe7   :  { %1281 = vmatmul.mubr.msk.bf16.vlgmr.msra.gmra.mrb[4].mxu1 %vm240_vm2, %v101_v39  ;;  %1282 = vmatmul.mubr.msk.bf16.vlgmr.msra.gmra.mrb[8].mxu0 %vm240_vm2, %v101_v39  ;;  %v1497_v31 = vld [vmem:[%s1916_s6 + $0x180] sm:$0xff]  }
  0xe8   :  { %1361 = vmatpush3.bf16.msra.mxu1 %v1460_v46  ;;  %1383 = vmatpush3.bf16.msra.mxu0 %v1461_v47 }
  0xe9   :  { %1362 = vmatprep.subr.bf16.mxu1 %v1462_v48  ;;  %1384 = vmatprep.subr.bf16.mxu0 %v1463_v49  ;;  %v142_v49 = vsub.s32 5, %v121_v27 }
  0xec   :  { %1363 = vmatpush3.bf16.msra.mxu1 %v1464_v50  ;;  %1385 = vmatpush3.bf16.msra.mxu0 %v1465_v51  ;;  %v150_v50 = vsub.s32 7, %v121_v27 }
  0xed   :  { %1364 = vmatprep.subr.bf16.mxu1 %v1466_v52  ;;  %1386 = vmatprep.subr.bf16.mxu0 %v1467_v53  ;;  %v139_v53 = vrot.slane %v118_v30, %v138_v43  ;;  %v1507_v43 = vld [vmem:[%s1916_s6 + $0x190] sm:$0xff]  }
  0xf0   :  { %1365 = vmatpush3.bf16.msra.mxu1 %v1468_v54  ;;  %1387 = vmatpush3.bf16.msra.mxu0 %v1469_v55  ;;  %v147_v54 = vrot.slane %v118_v30, %v146_v44  ;;  %v143_v55 = vrot.slane %v118_v30, %v142_v49  ;;  %v1508_v44 = vld [vmem:[%s1916_s6 + $0x158] sm:$0xff]   ;;  %v1512_v49 = vld [vmem:[%s1916_s6 + $0x160] sm:$0xff]  }
  0xf1   :  { %1366 = vmatprep.subr.bf16.mxu1 %v1470_v56  ;;  %1388 = vmatprep.subr.bf16.mxu0 %v1471_v57  ;;  %v151_v56 = vrot.slane %v118_v30, %v150_v50  ;;  %v1513_v50 = vld [vmem:[%s1916_s6 + $0x1e0] sm:$0xff]  }
  0xf4   :  { %1367 = vmatpush3.bf16.msra.mxu1 %v1472_v58  ;;  %1389 = vmatpush3.bf16.msra.mxu0 %v1473_v59 }
  0xf5   :  { %1368 = vmatprep.subr.bf16.mxu1 %v1474_v60  ;;  %1390 = vmatprep.subr.bf16.mxu0 %v1475_v61 }
  0xf8   :  { %1369 = vmatpush3.bf16.msra.mxu1 %v1476_v62  ;;  %1391 = vmatpush3.bf16.msra.mxu0 %v1477_v63 }
  0xf9   :  { %1370 = vmatprep.subr.bf16.mxu1 %v1478_v0  ;;  %1392 = vmatprep.subr.bf16.mxu0 %v1479_v1 }
  0xfc   :  { %1371 = vmatpush3.bf16.msra.mxu1 %v1480_v2  ;;  %1393 = vmatpush3.bf16.msra.mxu0 %v1481_v3 }
  0xfd   :  { %1372 = vmatprep.subr.bf16.mxu1 %v1482_v8  ;;  %1394 = vmatprep.subr.bf16.mxu0 %v1483_v9 }
 0x100   :  { %1373 = vmatpush3.bf16.msra.mxu1 %v1484_v12  ;;  %1395 = vmatpush3.bf16.msra.mxu0 %v1485_v13 }
 0x101   :  { %1374 = vmatprep.subr.bf16.mxu1 %v1486_v14  ;;  %1396 = vmatprep.subr.bf16.mxu0 %v1487_v15 }
 0x104   :  { %1375 = vmatpush3.bf16.msra.mxu1 %v1488_v16  ;;  %1397 = vmatpush3.bf16.msra.mxu0 %v1489_v17 }
 0x105   :  { %1404 = vmatprep.subr.bf16.mxu1 %v1492_v20  ;;  %1426 = vmatprep.subr.bf16.mxu0 %v1493_v21 }
 0x1b2   :  { %v278_v37 = vpop.f32.mrb[0].mxu1  ;;  %v319_v38 = vpop.f32.mrb[4].mxu0 }
 0x1b3   :  { %v279_v39 = vadd.f32 %v278_v37, %v123_v33  ;;  %v320_v40 = vadd.f32 %v319_v38, %v131_v34  ;;  %v280_v41 = vpop.f32.mrb[1].mxu1  ;;  %v321_v42 = vpop.f32.mrb[5].mxu0  ;;  %v1500_v37 = vld [vmem:[%s1916_s6 + $0x108] sm:$0xff]  }
 0x1b4   :  { %v281_v45 = vadd.f32 %v280_v41, %v127_v35  ;;  %v322_v46 = vadd.f32 %v321_v42, %v135_v36  ;;  %v282_v47 = vpop.f32.mrb[2].mxu1  ;;  %v323_v48 = vpop.f32.mrb[6].mxu0  ;;  %v1499_v35 = vld [vmem:[%s1916_s6 + $0x1c8] sm:$0xff]   ;;  %v1506_v41 = vld [vmem:[%s1916_s6 + $0x110] sm:$0xff]  }
 0x1b5   :  { %1530 = vtanh.f32 %v279_v39  ;;  %v283_v51 = vpop.f32.mrb[3].mxu1  ;;  %v324_v52 = vpop.f32.mrb[7].mxu0  ;;  %v1501_v38 = vld [vmem:[%s1916_s6 + $0x188] sm:$0xff]   ;;  %v1502_v39 = vld [vmem:[%s1916_s6 + $0x150] sm:$0xff]   ;;  %v1510_v47 = vld [vmem:[%s1916_s6 + $0x118] sm:$0xff]  }
 0x1b6   :  { %1532 = vtanh.f32 %v320_v40  ;;  %v1504_v40 = vld [vmem:[%s1916_s6 + $0x1d0] sm:$0xff]   ;;  %v1511_v48 = vld [vmem:[%s1916_s6 + $0x198] sm:$0xff]   ;;  %v1514_v51 = vld [vmem:[%s1916_s6 + $0x120] sm:$0xff]  }
 0x1b7   :  { %1534 = vtanh.f32 %v281_v45  ;;  %v1515_v52 = vld [vmem:[%s1916_s6 + $0x1a0] sm:$0xff]  }
 0x1b8   :  { %1536 = vtanh.f32 %v322_v46  ;;  %v1509_v46 = vld [vmem:[%s1916_s6 + $0x1d8] sm:$0xff]  }
 0x1ba   :  { %v360_v57 = vpop.f32.mrb[4].mxu1  ;;  %v401_v58 = vpop.f32.mrb[8].mxu0 }
 0x1bb   :  { %v361_v59 = vadd.f32 %v360_v57, %v139_v53  ;;  %v402_v60 = vadd.f32 %v401_v58, %v147_v54  ;;  %v362_v61 = vpop.f32.mrb[5].mxu1  ;;  %v403_v62 = vpop.f32.mrb[9].mxu0  ;;  %v1516_v53 = vld [vmem:[%s1916_s6 + $0x168] sm:$0xff]   ;;  %v1520_v57 = vld [vmem:[%s1916_s6 + $0x170] sm:$0xff]  }
 0x1bc   :  { %v363_v63 = vadd.f32 %v362_v61, %v143_v55  ;;  %v404_v0 = vadd.f32 %v403_v62, %v151_v56  ;;  %v364_v1 = vpop.f32.mrb[6].mxu1  ;;  %v405_v2 = vpop.f32.mrb[10].mxu0  ;;  %v1517_v54 = vld [vmem:[%s1916_s6 + $0x1e8] sm:$0xff]   ;;  %v1521_v58 = vld [vmem:[%s1916_s6 + $0x1f0] sm:$0xff]   ;;  %v1524_v61 = vld [vmem:[%s1916_s6 + $0x178] sm:$0xff]  }
 0x1bd   :  { %1538 = vtanh.f32 %v361_v59  ;;  %v365_v3 = vpop.f32.mrb[7].mxu1  ;;  %v406_v4 = vpop.f32.mrb[11].mxu0  ;;  %v1518_v55 = vld [vmem:[%s1916_s6 + $0x128] sm:$0xff]   ;;  %v1522_v59 = vld [vmem:[%s1916_s6 + $0x130] sm:$0xff]   ;;  %v1525_v62 = vld [vmem:[%s1916_s6 + $0x1f8] sm:$0xff]  }
 0x1be   :  { %1540 = vtanh.f32 %v402_v60  ;;  %v1519_v56 = vld [vmem:[%s1916_s6 + $0x1a8] sm:$0xff]   ;;  %v1523_v60 = vld [vmem:[%s1916_s6 + $0x1b0] sm:$0xff]   ;;  %v17_v3 = vstv %s1920_s9 }
 0x1bf   :  { %v1531_v5 = vpop.eup %1530  ;;  %1542 = vtanh.f32 %v363_v63  ;;  %v1526_v63 = vld [vmem:[%s1916_s6 + $0x138] sm:$0xff]   ;;  %18 = vst [vmem:[#allocation3] sm:$0x1] %v17_v3 }
 0x1c0   :  { %v1533_v6 = vpop.eup %1532  ;;  %v456_v7 = vpack.c.bf16 %v1531_v5, %v1531_v5  ;;  %1544 = vtanh.f32 %v404_v0  ;;  %v1527_v0 = vld [vmem:[%s1916_s6 + $0x1b8] sm:$0xff]  }
 0x1c1   :  { %v1535_v8 = vpop.eup %1534  ;;  %v458_v9 = vpack.c.bf16 %v1533_v6, %v1533_v6  ;;  %v1291_v6 = vld [vmem:[%s1921_s7] ss:$0 sm:$0xff] }
 0x1c2   :  { %v1537_v10 = vpop.eup %1536  ;;  %v472_v11 = vrot.slane %v456_v7, 4  ;;  %v457_v12 = vpack.c.bf16 %v1535_v8, %v1535_v8 }
 0x1c3   :  { %v474_v13 = vrot.slane %v458_v9, 4  ;;  %v459_v14 = vpack.c.bf16 %v1537_v10, %v1537_v10 }
 0x1c4   :  { %488 = vst [vmem:[#allocation2] sm:$0xf0] %v472_v11  ;;  %v473_v15 = vrot.slane %v457_v12, 4 }
 0x1c5   :  { %490 = vst [vmem:[#allocation2 + $0x10] sm:$0xf0] %v474_v13  ;;  %v475_v16 = vrot.slane %v459_v14, 4 }
 0x1c6   :  { %489 = vst [vmem:[#allocation2 + $0x8] sm:$0xf0] %v473_v15 }
 0x1c7   :  { %v1539_v17 = vpop.eup %1538  ;;  %491 = vst [vmem:[#allocation2 + $0x18] sm:$0xf0] %v475_v16 }
 0x1c8   :  { %v1541_v18 = vpop.eup %1540  ;;  %v460_v19 = vpack.c.bf16 %v1539_v17, %v1539_v17 }
 0x1c9   :  { %v1543_v20 = vpop.eup %1542  ;;  %v462_v21 = vpack.c.bf16 %v1541_v18, %v1541_v18 }
 0x1ca   :  { %v1545_v22 = vpop.eup %1544  ;;  %v476_v23 = vrot.slane %v460_v19, 4  ;;  %v461_v24 = vpack.c.bf16 %v1543_v20, %v1543_v20 }
 0x1cb   :  { %v478_v25 = vrot.slane %v462_v21, 4  ;;  %v463_v26 = vpack.c.bf16 %v1545_v22, %v1545_v22  ;;  %v496_v34 = vld [vmem:[#allocation2] sm:$0xff] }
 0x1cc   :  { %492 = vst [vmem:[#allocation2 + $0x20] sm:$0xf0] %v476_v23  ;;  %v477_v27 = vrot.slane %v461_v24, 4  ;;  %v498_v36 = vld [vmem:[#allocation2 + $0x10] sm:$0xff] }
 0x1cd   :  { %494 = vst [vmem:[#allocation2 + $0x30] sm:$0xf0] %v478_v25  ;;  %v479_v29 = vrot.slane %v463_v26, 4  ;;  %v497_v30 = vld [vmem:[#allocation2 + $0x8] sm:$0xff] }
 0x1ce   :  { %493 = vst [vmem:[#allocation2 + $0x28] sm:$0xf0] %v477_v27  ;;  %1055 = vmatprep.mubr.bf16.mxu1 %v497_v30  ;;  %v499_v33 = vld [vmem:[#allocation2 + $0x18] sm:$0xff] }
 0x1cf   :  { %495 = vst [vmem:[#allocation2 + $0x38] sm:$0xf0] %v479_v29  ;;  %1096 = vmatprep.mubr.bf16.mxu0 %v499_v33  ;;  %1056 = vmatmul.mubr.bf16.vlgmr.msra.gmra.mrb[8].mxu1 %v496_v34 }
 0x1d0   :  { %1097 = vmatmul.mubr.bf16.vlgmr.msra.gmra.mrb[12].mxu0 %v498_v36  ;;  %1405 = vmatpush3.bf16.msra.mxu1 %v1496_v28 }
 0x1d1   :  { %1427 = vmatpush3.bf16.msra.mxu0 %v1497_v31  ;;  %1406 = vmatprep.subr.bf16.mxu1 %v1498_v32 }
 0x1d2   :  { %1428 = vmatprep.subr.bf16.mxu0 %v1499_v35 }
 0x1d3   :  { %v500_v1 = vld [vmem:[#allocation2 + $0x20] sm:$0xff] }
 0x1d4   :  { %1407 = vmatpush3.bf16.msra.mxu1 %v1500_v37  ;;  %v502_v2 = vld [vmem:[#allocation2 + $0x30] sm:$0xff] }
 0x1d5   :  { %1429 = vmatpush3.bf16.msra.mxu0 %v1501_v38  ;;  %1408 = vmatprep.subr.bf16.mxu1 %v1502_v39  ;;  %v501_v42 = vld [vmem:[#allocation2 + $0x28] sm:$0xff]  ;;  %v1356_v38 = vld [vmem:[%s1922_s8] ss:$0 sm:$0xff] }
 0x1d6   :  { %1137 = vmatprep.mubr.bf16.mxu1 %v501_v42  ;;  %1430 = vmatprep.subr.bf16.mxu0 %v1504_v40  ;;  %v503_v45 = vld [vmem:[#allocation2 + $0x38] sm:$0xff] }
 0x1d7   :  { %1178 = vmatprep.mubr.bf16.mxu0 %v503_v45 }
 0x1d8   :  { %1409 = vmatpush3.bf16.msra.mxu1 %v1506_v41 }
 0x1d9   :  { %1431 = vmatpush3.bf16.msra.mxu0 %v1507_v43  ;;  %1410 = vmatprep.subr.bf16.mxu1 %v1508_v44 }
 0x1da   :  { %1432 = vmatprep.subr.bf16.mxu0 %v1509_v46  ;;  %v1357_v46 = vld [vmem:[#allocation3] ss:$0 sm:$0xff] }
 0x1dc   :  { %1411 = vmatpush3.bf16.msra.mxu1 %v1510_v47 }
 0x1dd   :  { %1433 = vmatpush3.bf16.msra.mxu0 %v1511_v48  ;;  %1412 = vmatprep.subr.bf16.mxu1 %v1512_v49 }
 0x1de   :  { %1434 = vmatprep.subr.bf16.mxu0 %v1513_v50 }
 0x1e0   :  { %1413 = vmatpush3.bf16.msra.mxu1 %v1514_v51 }
 0x1e1   :  { %1435 = vmatpush3.bf16.msra.mxu0 %v1515_v52  ;;  %1414 = vmatprep.subr.bf16.mxu1 %v1516_v53 }
 0x1e2   :  { %1436 = vmatprep.subr.bf16.mxu0 %v1517_v54 }
 0x1e4   :  { %1415 = vmatpush3.bf16.msra.mxu1 %v1518_v55 }
 0x1e5   :  { %1437 = vmatpush3.bf16.msra.mxu0 %v1519_v56  ;;  %1416 = vmatprep.subr.bf16.mxu1 %v1520_v57 }
 0x1e6   :  { %1438 = vmatprep.subr.bf16.mxu0 %v1521_v58 }
 0x1e8   :  { %1417 = vmatpush3.bf16.msra.mxu1 %v1522_v59 }
 0x1e9   :  { %1439 = vmatpush3.bf16.msra.mxu0 %v1523_v60  ;;  %1418 = vmatprep.subr.bf16.mxu1 %v1524_v61 }
 0x1ea   :  { %1440 = vmatprep.subr.bf16.mxu0 %v1525_v62 }
 0x1ec   :  { %1419 = vmatpush3.bf16.msra.mxu1 %v1526_v63 }
 0x1ed   :  { %1441 = vmatpush3.bf16.msra.mxu0 %v1527_v0 }
 0x1ef   :  { %1138 = vmatmul.mubr.bf16.vlgmr.msra.gmra.mrb[12].mxu1 %v500_v1 }
 0x1f0   :  { %1179 = vmatmul.mubr.bf16.vlgmr.msra.gmra.mrb[16].mxu0 %v502_v2 }
 0x2a2   :  { %v1376_v4 = vpop.f32.mrb[8].mxu1 }
 0x2a3   :  { %v1398_v5 = vpop.f32.mrb[12].mxu0  ;;  %v1377_v7 = vpop.f32.mrb[9].mxu1 }
 0x2a4   :  { %v1378_v8 = vadd.f32 %v1377_v7, %v1376_v4  ;;  %v1399_v9 = vpop.f32.mrb[13].mxu0  ;;  %v1379_v10 = vpop.f32.mrb[10].mxu1 }
 0x2a5   :  { %v1400_v11 = vadd.f32 %v1399_v9, %v1398_v5  ;;  %v1401_v12 = vpop.f32.mrb[14].mxu0  ;;  %v1380_v13 = vpop.f32.mrb[11].mxu1 }
 0x2a6   :  { %v1058_v14 = vadd.f32 %v1378_v8, %v1291_v6  ;;  %v1381_v15 = vadd.f32 %v1380_v13, %v1379_v10  ;;  %v1402_v16 = vpop.f32.mrb[15].mxu0 }
 0x2a7   :  { %v1403_v17 = vadd.f32 %v1402_v16, %v1401_v12 }
 0x2a8   :  { %v1099_v18 = vadd.f32 %v1400_v11, %v1058_v14  ;;  %v1061_v19 = vadd.f32 %v1381_v15, %v1291_v6 }
 0x2aa   :  { %v1102_v20 = vadd.f32 %v1403_v17, %v1061_v19 }
 0x2c2   :  { %v1420_v21 = vpop.f32.mrb[12].mxu1 }
 0x2c3   :  { %v1442_v22 = vpop.f32.mrb[16].mxu0  ;;  %v1421_v23 = vpop.f32.mrb[13].mxu1 }
 0x2c4   :  { %v1422_v24 = vadd.f32 %v1421_v23, %v1420_v21  ;;  %v1443_v25 = vpop.f32.mrb[17].mxu0  ;;  %v1423_v26 = vpop.f32.mrb[14].mxu1 }
 0x2c5   :  { %v1444_v27 = vadd.f32 %v1443_v25, %v1442_v22  ;;  %v1445_v28 = vpop.f32.mrb[18].mxu0  ;;  %v1424_v29 = vpop.f32.mrb[15].mxu1 }
 0x2c6   :  { %v1140_v30 = vadd.f32 %v1422_v24, %v1099_v18  ;;  %v1425_v31 = vadd.f32 %v1424_v29, %v1423_v26  ;;  %v1446_v32 = vpop.f32.mrb[19].mxu0 }
 0x2c7   :  { %v1447_v33 = vadd.f32 %v1446_v32, %v1445_v28 }
 0x2c8   :  { %v1181_v34 = vadd.f32 %v1444_v27, %v1140_v30  ;;  %v1143_v35 = vadd.f32 %v1425_v31, %v1102_v20 }
 0x2ca   :  { %v1189_v36 = vmul.f32 0.2, %v1181_v34  ;;  %v1184_v37 = vadd.f32 %v1447_v33, %v1143_v35  ;;  %vm1187_vm3 = vcmp.gt.f32.partialorder %v1181_v34, 0.0 }
 0x2cc   :  { %v1190_v39 = vmul.f32 0.2, %v1184_v37  ;;  %v1191_v40 = vsel %vm1187_vm3, %v1181_v34, %v1189_v36  ;;  %vm1188_vm4 = vcmp.gt.f32.partialorder %v1184_v37, 0.0 }
 0x2cd   :  { %v1200_v41 = vmul.f32 %v1356_v38, %v1191_v40 }
 0x2ce   :  { %v1192_v42 = vsel %vm1188_vm4, %v1184_v37, %v1190_v39 }
 0x2cf   :  { %v1202_v43 = vsel %vm240_vm2, %v1200_v41, 0.0  ;;  %v1201_v44 = vmul.f32 %v1356_v38, %v1192_v42 }
 0x2d0   :  { %1203 = vadd.xlane.f32.xlu0 %v1202_v43 }
 0x2d1   :  { %v1205_v45 = vsel %vm240_vm2, %v1201_v44, 0.0 }
 0x2d4   :  { %1206 = vadd.xlane.f32.xlu0 %v1205_v45 }
 0x35d   :  { %v1204_v47 = vpop.xlane.xlu0 %1203 }
 0x35e   :  { %v1215_v48 = vadd.f32 %v1357_v46, %v1204_v47 }
 0x360   :  { %v1217_v49 = vsub.f32 0.0, %v1215_v48 }
 0x361   :  { %v1207_v50 = vpop.xlane.xlu0 %1206 }
 0x362   :  { %v1219_v51 = vmul.f32 1.442695, %v1217_v49  ;;  %v1233_v52 = vand.u32 2147483647, %v1217_v49  ;;  %v1216_v53 = vadd.f32 %v1357_v46, %v1207_v50  ;;  %v1232_v10 = vmax.f32 %v1217_v49, 0.0 }
 0x364   :  { %1546 = vpow2.f32 %v1219_v51  ;;  %v1234_v54 = vsub.f32 0.0, %v1233_v52  ;;  %v1218_v55 = vsub.f32 0.0, %v1216_v53  ;;  %v1242_v56 = vand.u32 2147483647, %v1216_v53 }
 0x365   :  { %v1241_v11 = vmax.f32 %v1216_v53, 0.0 }
 0x366   :  { %v1235_v57 = vmul.f32 1.442695, %v1234_v54  ;;  %v1221_v58 = vmul.f32 1.442695, %v1218_v55  ;;  %v1243_v59 = vsub.f32 0.0, %v1242_v56 }
 0x368   :  { %1548 = vpow2.f32 %v1235_v57  ;;  %v1244_v60 = vmul.f32 1.442695, %v1243_v59 }
 0x369   :  { %1550 = vpow2.f32 %v1221_v58 }
 0x36a   :  { %1552 = vpow2.f32 %v1244_v60 }
 0x36e   :  { %v1547_v61 = vpop.eup %1546 }
 0x36f   :  { %v1223_v62 = vadd.f32 1.0, %v1547_v61 }
 0x371   :  { %1554 = vrcp.f32 %v1223_v62 }
 0x372   :  { %v1549_v63 = vpop.eup %1548 }
 0x373   :  { %v1551_v0 = vpop.eup %1550  ;;  %v1237_v1 = vadd.f32 1.0, %v1549_v63 }
 0x374   :  { %v1224_v2 = vadd.f32 1.0, %v1551_v0  ;;  %v1553_v3 = vpop.eup %1552 }
 0x375   :  { %1556 = vlog2.f32 %v1237_v1  ;;  %v1246_v4 = vadd.f32 1.0, %v1553_v3 }
 0x376   :  { %1558 = vrcp.f32 %v1224_v2 }
 0x377   :  { %1560 = vlog2.f32 %v1246_v4 }
 0x37b   :  { %v1555_v5 = vpop.eup %1554 }
 0x37c   :  { %1230 = vst.msk [vmem:[%s1923_s10] sm:$0xff] %vm1229_vm5, %v1555_v5 }
 0x37f   :  { %v1557_v6 = vpop.eup %1556 }
 0x380   :  { %v1559_v7 = vpop.eup %1558  ;;  %v1239_v8 = vmul.f32 0.6931472, %v1557_v6 }
 0x381   :  { %1231 = vst.msk [vmem:[%s1923_s10 + $0x8] sm:$0xff] %vm1229_vm5, %v1559_v7  ;;  %v1561_v9 = vpop.eup %1560 }
 0x382   :  { %v1248_v12 = vmul.f32 0.6931472, %v1561_v9  ;;  %v1240_v13 = vadd.f32 %v1239_v8, %v1232_v10 }
 0x384   :  { %v1249_v14 = vadd.f32 %v1248_v12, %v1241_v11 }
 0x386   :  { %v1250_v15 = vadd.f32 %v1249_v14, %v1240_v13 }
 0x388   :  { %1251 = vst.msk [vmem:[%s1924_s11] sm:$0xff] %vm1229_vm5, %v1250_v15 }

</bundles_post_ra>
